<compile_context>
chip_gen: v5e
topology: v5e:2x2
jax: 0.10.0
libtpu: 0.0.40
codegen_flags: <defaults>
</compile_context>

<pallas_src>
import functools

import jax
import jax.numpy as jnp
from jax.experimental import pallas as pl
from jax.experimental.pallas import tpu as pltpu


def _round_up(x, m):
    return (x + m - 1) // m * m


def _sum_dims01_kernel(x_ref, o_ref, acc_ref, *, m_total, tm, need_mask):
    # x_ref:   (tm, tn) tile of the flattened (M, N) input.
    # o_ref:   (1, tn) f32 output tile (revisited across the reduction axis).
    # acc_ref: (8, tn) f32 vreg-aligned partial-sum accumulator (VMEM scratch).
    k = pl.program_id(1)
    k_last = pl.num_programs(1) - 1

    @pl.when(k == 0)
    def _init():
        acc_ref[...] = jnp.zeros_like(acc_ref)

    def accumulate(x):
        # (tm, tn) -> (tm//8, 8, tn) is a layout-free regrouping of sublane
        # slabs; the axis-0 reduction is pure full-vreg VPU adds (no XLU work,
        # no masked 1-sublane stores) into the (8, tn) accumulator.
        acc_ref[...] += jnp.sum(x.reshape(tm // 8, 8, x.shape[-1]), axis=0)

    if need_mask:
        # Only the final reduction step can contain padded rows; keep the hot
        # loop mask-free and pay the iota/compare/select exactly once.
        @pl.when(k < k_last)
        def _hot():
            accumulate(x_ref[...])

        @pl.when(k == k_last)
        def _edge():
            x = x_ref[...]
            row = k * tm + jax.lax.broadcasted_iota(jnp.int32, x.shape, 0)
            accumulate(jnp.where(row < m_total, x, jnp.zeros_like(x)))
    else:
        accumulate(x_ref[...])

    @pl.when(k == k_last)
    def _finalize():
        # One sublane (XLU) reduce + one lane-dense store per column tile.
        o_ref[...] = jnp.sum(acc_ref[...], axis=0, keepdims=True)


def reduce_sum_dims01(a, *, tn=None, tm=None):
    """torch.sum(a, (0, 1)) for a 3-D float32 array a of shape (B, D, N)."""
    B, D, N = a.shape
    M = B * D
    x = a.reshape(M, N)  # merging leading dims is layout-free for row-major input

    # ---- lane (N) tile ---------------------------------------------------
    TN_CAP = 1024
    if tn is None:
        tn = min(N, TN_CAP)
        # Megacore: v7x has 2 TensorCores.  Make sure the "parallel" grid axis
        # has >= 2 units whenever N allows it so both cores stream disjoint
        # column ranges of this HBM-bandwidth-bound reduction.
        if pl.cdiv(N, tn) < 2 and N > 128:
            tn = max(128, _round_up(pl.cdiv(N, 2), 128))

    # ---- reduction (M = B*D) tile -----------------------------------------
    # Per-tile input budget: big enough to amortize the ~0.35us per-grid-step
    # overhead, small enough that the double-buffered pipeline fits easily in
    # v7x's 64 MiB VMEM; use a larger tile when >= 96 MiB VMEM (v5e/v6e).
    try:
        vmem_cap = pltpu.get_tpu_info().vmem_capacity_bytes
    except Exception:
        vmem_cap = 64 * 1024 * 1024  # conservative default (v7x-sized)
    tile_budget_bytes = (16 if vmem_cap >= 96 * 1024 * 1024 else 8) * 1024 * 1024
    if tm is None:
        tm_cap = max(8, (tile_budget_bytes // (tn * 4)) // 8 * 8)
        tm = min(_round_up(M, 8), tm_cap)
    else:
        tm = _round_up(tm, 8)  # accumulator regrouping needs tm % 8 == 0

    grid = (pl.cdiv(N, tn), pl.cdiv(M, tm))  # reduction axis last
    need_mask = (M % tm) != 0

    kernel = functools.partial(
        _sum_dims01_kernel, m_total=M, tm=tm, need_mask=need_mask)

    # Scoped-VMEM request derived from the actual tiles (double-buffered input
    # + accumulator scratch + output) plus slack; capped to leave headroom on
    # v7x's 64 MiB VMEM.
    vmem_limit = 2 * tm * tn * 4 + (8 + 2) * tn * 4 + (4 << 20)
    vmem_limit = int(min(max(vmem_limit, 16 << 20), 48 << 20))

    cost = pl.CostEstimate(
        flops=M * N,                      # one add per input element
        transcendentals=0,
        bytes_accessed=M * N * 4 + N * 4)

    out2d = pl.pallas_call(
        kernel,
        out_shape=jax.ShapeDtypeStruct((1, N), jnp.float32),
        grid_spec=pltpu.PrefetchScalarGridSpec(
            num_scalar_prefetch=0,
            grid=grid,
            in_specs=[pl.BlockSpec((tm, tn), lambda j, k: (k, j))],
            out_specs=pl.BlockSpec((1, tn), lambda j, k: (0, j)),
            scratch_shapes=[pltpu.VMEM((8, tn), jnp.float32)],
        ),
        compiler_params=pltpu.CompilerParams(
            dimension_semantics=("parallel", "arbitrary"),
            vmem_limit_bytes=vmem_limit,
        ),
        cost_estimate=cost,
    )(x)
    return out2d.reshape(N)


if __name__ == "__main__":
    key = jax.random.PRNGKey(0)
    k1, k2 = jax.random.split(key)

    # Shape consistent with the module: 3-D float32, sum over dims (0, 1).
    B, D, N = 2, 4, 256
    a = jax.random.normal(k1, (B, D, N), dtype=jnp.float32)
    out = jax.block_until_ready(reduce_sum_dims01(a))
    ref = jnp.sum(a, axis=(0, 1))
    assert out.shape == (N,)
    assert out.dtype == jnp.float32
    assert jnp.allclose(out, ref, rtol=1e-5, atol=1e-5), "mismatch vs jnp.sum"

    # Exercise the multi-step reduction + gated edge-mask path explicitly
    # (M = 48, tm = 32 -> 2 reduction steps, last one ragged).
    B2, D2, N2 = 3, 16, 384
    b = jax.random.normal(k2, (B2, D2, N2), dtype=jnp.float32)
    out2 = jax.block_until_ready(reduce_sum_dims01(b, tn=128, tm=32))
    ref2 = jnp.sum(b, axis=(0, 1))
    assert jnp.allclose(out2, ref2, rtol=1e-5, atol=1e-5), "tiled path mismatch"

    print("KERNEL_OK")
</pallas_src>

<mosaic_0001>
module attributes {stable_mosaic.version = 11 : i64} {
  func.func @_sum_dims01_kernel(%arg0: i32, %arg1: i32, %arg2: memref<8x128xf32, #tpu.memory_space<vmem>>, %arg3: memref<1x128xf32, #tpu.memory_space<vmem>>, %arg4: memref<8x128xf32, #tpu.memory_space<vmem>>) attributes {dimension_semantics = [#tpu.dimension_semantics<parallel>, #tpu.dimension_semantics<arbitrary>], iteration_bounds = array<i64: 2, 1>, scalar_prefetch = 0 : i64, scratch_operands = 1 : i64, tpu.core_type = #tpu.core_type<tc>, window_params = [{transform_indices = @transform_0, window_bounds = array<i64: 8, 128>}, {transform_indices = @transform_1, window_bounds = array<i64: 1, 128>}]} {
    %c0_i32 = arith.constant 0 : i32
    %0 = arith.cmpi eq, %arg1, %c0_i32 : i32
    %1 = arith.extui %0 : i1 to i32
    %c0_i32_0 = arith.constant 0 : i32
    %2 = arith.cmpi ne, %1, %c0_i32_0 : i32
    scf.if %2 {
      %cst_8 = arith.constant 0.000000e+00 : f32
      %12 = vector.broadcast %cst_8 : f32 to vector<8x128xf32>
      %c0_9 = arith.constant 0 : index
      %c0_10 = arith.constant 0 : index
      %13 = vector.load %arg4[%c0_9, %c0_10] : memref<8x128xf32, #tpu.memory_space<vmem>>, vector<8x128xf32>
      tpu.vector_store %arg4[%c0_9, %c0_10], %12 {strides = array<i32>} : memref<8x128xf32, #tpu.memory_space<vmem>>, vector<8x128xf32>,
    } else {
    }
    %c0 = arith.constant 0 : index
    %c0_1 = arith.constant 0 : index
    %3 = vector.load %arg2[%c0, %c0_1] : memref<8x128xf32, #tpu.memory_space<vmem>>, vector<8x128xf32>
    %c0_2 = arith.constant 0 : index
    %c0_3 = arith.constant 0 : index
    %4 = vector.load %arg4[%c0_2, %c0_3] : memref<8x128xf32, #tpu.memory_space<vmem>>, vector<8x128xf32>
    %5 = vector.shape_cast %3 : vector<8x128xf32> to vector<1x8x128xf32>
    %cst = arith.constant dense<0.000000e+00> : vector<8x128xf32>
    %6 = vector.multi_reduction <add>, %5, %cst [0] : vector<1x8x128xf32> to vector<8x128xf32>
    %7 = arith.addf %4, %6 : vector<8x128xf32>
    %c0_4 = arith.constant 0 : index
    %c0_5 = arith.constant 0 : index
    %8 = vector.load %arg4[%c0_4, %c0_5] : memref<8x128xf32, #tpu.memory_space<vmem>>, vector<8x128xf32>
    tpu.vector_store %arg4[%c0_4, %c0_5], %7 {strides = array<i32>} : memref<8x128xf32, #tpu.memory_space<vmem>>, vector<8x128xf32>,
    %c0_i32_6 = arith.constant 0 : i32
    %9 = arith.cmpi eq, %arg1, %c0_i32_6 : i32
    %10 = arith.extui %9 : i1 to i32
    %c0_i32_7 = arith.constant 0 : i32
    %11 = arith.cmpi ne, %10, %c0_i32_7 : i32
    scf.if %11 {
      %c0_8 = arith.constant 0 : index
      %c0_9 = arith.constant 0 : index
      %12 = vector.load %arg4[%c0_8, %c0_9] : memref<8x128xf32, #tpu.memory_space<vmem>>, vector<8x128xf32>
      %cst_10 = arith.constant dense<0.000000e+00> : vector<128xf32>
      %13 = vector.multi_reduction <add>, %12, %cst_10 [0] : vector<8x128xf32> to vector<128xf32>
      %14 = vector.shape_cast %13 : vector<128xf32> to vector<1x128xf32>
      %c0_11 = arith.constant 0 : index
      %c0_12 = arith.constant 0 : index
      %15 = vector.load %arg3[%c0_11, %c0_12] : memref<1x128xf32, #tpu.memory_space<vmem>>, vector<1x128xf32>
      tpu.vector_store %arg3[%c0_11, %c0_12], %14 {strides = array<i32>} : memref<1x128xf32, #tpu.memory_space<vmem>>, vector<1x128xf32>,
    } else {
    }
    return
  }
  func.func @transform_0(%arg0: i32, %arg1: i32) -> (i32, i32) {
    %c0_i32 = arith.constant 0 : i32
    return %arg1, %arg0 : i32, i32
  }
  func.func @transform_1(%arg0: i32, %arg1: i32) -> (i32, i32) {
    %c0_i32 = arith.constant 0 : i32
    %c0_i32_0 = arith.constant 0 : i32
    return %c0_i32, %arg0 : i32, i32
  }
}

</mosaic_0001>

<bundles_post_ra>
// kernel: tpu_custom_call.1
= control target key start
LH: loop header
LB: loop body
LE: loop exit
PB: predicated region body
PF: predicated region fallthrough
CT: control target
= control target key end

     0   :  { %6 = vsyncpa [#allocation4], 0  ;;  %s576_s0 = inlined_call_operand.hbm [shape: f32[8,256], index: 0, kind: input, shape index: {}]   ;;  %s577_s1 = inlined_call_operand.hbm [shape: f32[1,256], index: 1, kind: output, shape index: {}]  }
   0x1   :  { %8 = vsyncpa [#allocation4 + $0x1], 0 }
   0x2   :  { %9 = vsyncpa [#allocation5], 0 }
   0x3   :  { %11 = vsyncpa [#allocation5 + $0x1], 0  ;;  %s455_s6 = smov 0   ;;  %s457_s7 = smov 0  }
   0x4   :  { %s459_s8 = smov 0   ;;  %s461_s9 = smov 0  }
   0x5   :  { %s463_s10 = smov 0   ;;  %s465_s11 = smov 0  }
   0x6 LB: > { %s259_s12 = sadd.s32 4294967295, %s443_s11   ;;  %s260_s13 = sadd.s32 4294967294, %s443_s11   ;;  %s443_s11 = sphi %s465_s11, %s17_s11   ;;  %s439_s10 = sphi %s463_s10, %s586_s10   ;;  %s435_s9 = sphi %s461_s9, %s585_s9   ;;  %s431_s8 = sphi %s459_s8, %s584_s8   ;;  %s427_s7 = sphi %s457_s7, %s583_s7   ;;  %s423_s6 = sphi %s455_s6, %s582_s6  }
   0x7   : > { %s29_s14 = sadd.s32 1, %s439_s10  ;;  %s38_s15 = sadd.s32 1, %s431_s8 }
   0x8   : > { %p31_p0 = scmp.ge.s32.totalorder %s29_s14, 2  ;;  %p45_p1 = scmp.ne.s32.totalorder %s431_s8, %s427_s7 }
   0x9   : > { %p46_p2 = scmp.eq.s32.totalorder %s443_s11, 0  ;;  %p51_p3 = scmp.ne.s32.totalorder %s427_s7, %s423_s6 }
   0xa   : > { %s588_s14 = smov (%p31_p0, %s29_s14), 0  ;;  %p52_p5 = scmp.eq.s32.totalorder %s259_s12, 0 }
   0xb   : > { %p496_p4 = por %p46_p2, %p45_p1  ;;  %s34_s17 = ssub.s32 %s439_s10, %s588_s14 }
   0xc   : > { %p75_p6 = scmp.eq.s32.totalorder %s259_s12, 1  ;;  %p36_p7 = scmp.eq.s32.totalorder %s34_s17, 0 }
   0xd   : > { %p502_p8 = por %p52_p5, %p51_p3  ;;  %p81_p10 = scmp.eq.s32.totalorder %s260_s13, 1 }
   0xe   : > { %p506_p9 = por %p75_p6, %p45_p1  ;;  %p262_p12 = scmp.ge.s32.totalorder %s443_s11, 2 }
   0xf   : > { %s511_s20 = scalar_select %p36_p7, %s431_s8, %s38_s15  }
  0x10   : > { %p513_p11 = por %p81_p10, %p51_p3  ;;  %p281_p13 = scmp.lt.s32.totalorder %s443_s11, 2 }
  0x11   : > { %s101_s22 = sand.u32 1, %s431_s8   ;;  %s264_s24 = sshll.u32 %s439_s10, 3 }
  0x12   : > { %s263_s23 = sshll.u32 %s101_s22, 3  ;;  %s111_s27 = scalar_lea.hbm %s576_s0, %s264_s24 }
  0x13   : > { %s105_s28 = scalar_lea.vmem [#allocation3], %s263_s23  ;;  %s113_s30 = sshll.u32 %s111_s27, 4  ;;  %s114_s30 = int_to_ptr.hbm [resolvable:$true] %s113_s30 }
  0x14   : > { %s115_s29 = sshll.u32 %s105_s28, 4  ;;  %p274_p0 = pnand %p281_p13, %p496_p4  ;;  %s116_s29 = int_to_ptr.vmem [resolvable:$true] %s115_s29 }
  0x15   : > { %p265_p1 = scmp.ge.s32.totalorder %s443_s11, 1  ;;  %p120_p2 = scmp.lt.s32.totalorder %s443_s11, 3 }
  0x16   : > { %s102_s2 = scalar_lea.sflag [#allocation4], %s101_s22 }
  0x17   : > { %276 = dma.hbm_to_vmem [thread:$0]  (!%p274_p0), %s114_s30, 128, %s116_s29, %s102_s2  }
  0x18   : > { %p121_p3 = pnand %p265_p1, %p120_p2 }
  0x19   : > { %s529_s3 = sand.u32 (!%p121_p3), 1, %s427_s7  }
  0x1a   : > { %124 = sbr.rel (%p121_p3) target bundleno = 48 (0x30), region = 24  ;;  %s266_s4 = sshll.u32 (!%p121_p3), %s529_s3, 3 }
  0x1b   : > { %s127_s5 = scalar_lea.sflag (!%p121_p3), [#allocation4], %s529_s3  ;;  %s130_s12 = scalar_lea.vmem (!%p121_p3), [#allocation3], %s266_s4 }
  0x1f   : > { %414 = dma.done.wait (%p502_p8), %s127_s5, 128  }
  0x20   : > { %416 = vsyncadd (%p502_p8), %s127_s5, 4294967168  ;;  %v154_v0 = vld [vmem:[%s130_s12] sm:$0xff]  ;;  %s179_s16 = scalar_lea.hbm %s577_s1, %s435_s9  ;;  %s148_s17 = scalar_lea.vmem [#allocation6], %s529_s3 }
  0x21   : > { %v163_v1 = vrot.slane %v154_v0, 4  ;;  %s181_s22 = sshll.u32 %s148_s17, 4  ;;  %s183_s23 = sshll.u32 %s179_s16, 4  ;;  %s182_s22 = int_to_ptr.vmem [resolvable:$true] %s181_s22  ;;  %s184_s23 = int_to_ptr.hbm [resolvable:$true] %s183_s23 }
  0x22   : > { %s171_s18 = scalar_lea.sflag [#allocation5], %s529_s3  ;;  %s375_s24 = sshra.s32 %s184_s23, 4  ;;  %s376_s24 = int_to_ptr.hbm [resolvable:$true] %s375_s24 }
  0x23   : > { %v164_v2 = vadd.f32 %v163_v1, %v154_v0  ;;  %s377_s25 = scalar_lea.hbm %s376_s24, 1  ;;  %s381_s9 = scalar_lea.hbm %s577_s1, 2 }
  0x24   : > { %p378_p4 = scmp.ne.s32.totalorder %s376_s24, %s377_s25  ;;  %p382_p7 = scmp.lt.s32.totalorder %s376_s24, %s577_s1 }
  0x25   : > { %v165_v3 = vrot.slane %v164_v2, 2  ;;  %p383_p8 = scmp.lt.s32.totalorder %s381_s9, %s377_s25 }
  0x26   : > { %p379_p5 = pnand %p378_p4, %p506_p9 }
  0x27   : > { %v166_v4 = vadd.f32 %v165_v3, %v164_v2  ;;  %p384_p10 = por %p383_p8, %p382_p7 }
  0x28   : > { %p380_p6 = pneg %p379_p5 }
  0x29   : > { %v167_v5 = vrot.slane %v166_v4, 1 }
  0x2a   : > { %p385_p13 = pnand %p384_p10, %p380_p6 }
  0x2b   : > { %v168_v6 = vadd.f32 %v167_v5, %v166_v4 }
  0x2d   : > { %169 = vst [vmem:[%s148_s17] sm:$0x1] %v168_v6 }
  0x2e   : > { %388 = shalt.err (!%p385_p13)
}
  0x2f   : > { %271 = dma.vmem_to_hbm [thread:$0]  (%p506_p9), %s182_s22, 16, %s184_s23, %s171_s18  }
  0x30 PF: > { %s195_s30 = sand.u32 1, %s423_s6   ;;  %p278_p0 = pnand %p262_p12, %p513_p11 }
  0x31   : > { %s196_s2 = scalar_lea.sflag [#allocation5], %s195_s30 }
  0x32   : > { %p279_p1 = pneg %p278_p0 }
  0x34   : > { %418 = dma.done.wait (%p279_p1), %s196_s2, 16  }
  0x35   : > { %420 = vsyncadd (%p279_p1), %s196_s2, 4294967280  ;;  %s17_s11 = sadd.s32 1, %s443_s11   ;;  %s582_s6 = smov %s427_s7 }
  0x36   : > { %p14_p2 = scmp.ge.s32.totalorder %s17_s11, 4   ;;  %s583_s7 = smov %s431_s8 }
  0x37   : > { %s584_s8 = smov %s511_s20  ;;  %s585_s9 = smov %s439_s10 }
  0x38   : > { %s586_s10 = smov %s588_s14  ;;  %16 = sbr.rel (!%p14_p2) target bundleno = 6 (0x6), region = 77 }
  0x3d   :  { %201 = vsyncpa [#allocation4], 1 }
  0x3e   :  { %203 = vsyncpa [#allocation4 + $0x1], 1 }
  0x3f   :  { %204 = vsyncpa [#allocation5], 1 }
  0x40   :  { %206 = vsyncpa [#allocation5 + $0x1], 1 }

</bundles_post_ra>
